<compile_context>
chip_gen: v7x
topology: tpu7x:2x2x1
jax: 0.10.0
libtpu: 0.0.40
codegen_flags: <defaults>
</compile_context>

<pallas_src>
import math
import functools

import jax
import jax.numpy as jnp
from jax.experimental import pallas as pl
from jax.experimental.pallas import tpu as pltpu


# ---------------------------------------------------------------------------
# Kernels (pure elementwise, VPU only; no MXU)
# ---------------------------------------------------------------------------

def _pos_enc_kernel_mask(x_ref, pe_ref, m_ref, o_ref, *, scale):
    """o = x * sqrt(C) + pe * mask   (mask broadcasts over C, pe over B)."""
    x = x_ref[...].astype(jnp.float32)      # (Bb, C, Tt)
    pe = pe_ref[...].astype(jnp.float32)    # (1,  C, Tt)
    m = m_ref[...].astype(jnp.float32)      # (Bb, 1, Tt)
    o_ref[...] = (x * scale + pe * m).astype(o_ref.dtype)


def _pos_enc_kernel_nomask(x_ref, pe_ref, o_ref, *, scale):
    """o = x * sqrt(C) + pe   (pe broadcasts over B)."""
    x = x_ref[...].astype(jnp.float32)      # (Bb, C, Tt)
    pe = pe_ref[...].astype(jnp.float32)    # (1,  C, Tt)
    o_ref[...] = (x * scale + pe).astype(o_ref.dtype)


# ---------------------------------------------------------------------------
# Sinusoidal table (identical math to the PyTorch __init__)
# ---------------------------------------------------------------------------

def _make_pe(channels, max_len=5000):
    position = jnp.arange(0, max_len, dtype=jnp.float32)[:, None]             # [max_len, 1]
    div_term = jnp.exp(
        jnp.arange(0, channels, 2, dtype=jnp.float32) * -(math.log(10000.0) / channels)
    )                                                                          # [C/2]
    pe = jnp.zeros((max_len, channels), jnp.float32)
    pe = pe.at[:, 0::2].set(jnp.sin(position * div_term))
    pe = pe.at[:, 1::2].set(jnp.cos(position * div_term))
    pe = pe[None].transpose(0, 2, 1)                                           # [1, C, max_len]
    return pe


# ---------------------------------------------------------------------------
# Tiling helpers
# ---------------------------------------------------------------------------

_SMALL_BYTES = 1 << 20          # whole-array single-step path below this
_T_TILE_MAX = 4096              # lane tile upper bound (multiple of 128)
_T_TILE_MIN = 128               # lane tile lower bound (one vreg of lanes)
_BLOCK_F32_ELEMS = 1 << 18      # ~1 MiB of f32 per x-block target


def _pick_t_tile(C, T):
    """Lane-dense T tile: ~1 MiB f32 per (1, C, t) block, multiple of 128."""
    t = _BLOCK_F32_ELEMS // max(C, 1)
    t = max(_T_TILE_MIN, min(_T_TILE_MAX, t))
    t = (t // 128) * 128
    return min(t, T) if T % 128 == 0 and T <= t else (T if T <= t else t)


# ---------------------------------------------------------------------------
# Module wrapper
# ---------------------------------------------------------------------------

class PositionalEncoding:
    def __init__(self, channels, dropout=0.0, max_len=5000):
        if channels % 2 != 0:
            raise ValueError(
                "Cannot use sin/cos positional encoding with odd channels (got channels={:d})".format(channels)
            )
        if dropout != 0.0:
            # TODO(synk): training-mode nn.Dropout is not implemented in this kernel.
            raise NotImplementedError("dropout > 0 is not supported in the Pallas PositionalEncoding")
        self.channels = channels
        self.pe = _make_pe(channels, max_len)   # buffer, shape [1, C, max_len], f32

    # -- internal launcher ---------------------------------------------------
    def _launch(self, x, pe_slice, mask_arr, scale):
        B, C, T = x.shape
        itemsize = jnp.dtype(x.dtype).itemsize
        use_mask = mask_arr is not None

        if B * C * T * itemsize <= _SMALL_BYTES:
            # Tiny tensors: one grid step over the whole array (per-step overhead
            # would dominate otherwise).
            grid = (1,)
            x_spec = pl.BlockSpec((B, C, T), lambda i: (0, 0, 0))
            pe_spec = pl.BlockSpec((1, C, T), lambda i: (0, 0, 0))
            m_spec = pl.BlockSpec((B, 1, T), lambda i: (0, 0, 0))
            out_spec = pl.BlockSpec((B, C, T), lambda i: (0, 0, 0))
            dims = ("arbitrary",)
        else:
            # General case: tile T lane-densely, B innermost so the shared pe
            # block index changes least often (its DMA is skipped across B).
            t_tile = _pick_t_tile(C, T)
            grid = (pl.cdiv(T, t_tile), B)
            x_spec = pl.BlockSpec((1, C, t_tile), lambda t, b: (b, 0, t))
            pe_spec = pl.BlockSpec((1, C, t_tile), lambda t, b: (0, 0, t))
            m_spec = pl.BlockSpec((1, 1, t_tile), lambda t, b: (b, 0, t))
            out_spec = pl.BlockSpec((1, C, t_tile), lambda t, b: (b, 0, t))
            dims = ("parallel", "parallel")

        if use_mask:
            kernel = functools.partial(_pos_enc_kernel_mask, scale=scale)
            in_specs = [x_spec, pe_spec, m_spec]
            args = (x, pe_slice, mask_arr)
        else:
            kernel = functools.partial(_pos_enc_kernel_nomask, scale=scale)
            in_specs = [x_spec, pe_spec]
            args = (x, pe_slice)

        return pl.pallas_call(
            kernel,
            out_shape=jax.ShapeDtypeStruct((B, C, T), x.dtype),
            grid_spec=pltpu.PrefetchScalarGridSpec(
                num_scalar_prefetch=0,
                grid=grid,
                in_specs=in_specs,
                out_specs=out_spec,
            ),
            compiler_params=pltpu.CompilerParams(dimension_semantics=dims),
        )(*args)

    # -- public forward --------------------------------------------------------
    def __call__(self, x, mask=None, first_idx=None, last_idx=None):
        """
        Shapes:
            x: [B, C, T]
            mask: [B, 1, T] or None
            first_idx / last_idx: static Python ints or None
        """
        B, C, T = x.shape
        assert C == self.channels
        scale = float(math.sqrt(self.channels))

        if first_idx is None:
            if self.pe.shape[2] < T:
                raise RuntimeError(
                    f"Sequence is {T} but PositionalEncoding is limited to {self.pe.shape[2]}. "
                    "See max_len argument."
                )
            pe_slice = self.pe[:, :, :T]                     # [1, C, T] (f32)
            if mask is not None:
                mask_arr = jnp.asarray(mask)
                if not jnp.issubdtype(mask_arr.dtype, jnp.floating):
                    # bool / int masks: cast once in the wrapper; float masks
                    # stream in their own dtype and cast on the VPU.
                    mask_arr = mask_arr.astype(x.dtype)
            else:
                mask_arr = None                              # no synthetic ones tensor
        else:
            if not isinstance(first_idx, int) or not isinstance(last_idx, int):
                raise ValueError("first_idx / last_idx must be static Python ints")
            pe_slice = self.pe[:, :, first_idx:last_idx]     # [1, C, T]
            # PyTorch ignores the mask in this branch.
            mask_arr = None

        assert pe_slice.shape[2] == T
        return self._launch(x, pe_slice, mask_arr, scale)


# ---------------------------------------------------------------------------
# Self-test
# ---------------------------------------------------------------------------

if __name__ == "__main__":
    key = jax.random.PRNGKey(0)

    # ---- small-tensor path (single grid step) ----
    B, C, T = 2, 32, 16
    kx, krest = jax.random.split(key)
    x = jax.random.normal(kx, (B, C, T), dtype=jnp.float32)
    lengths = jnp.array([12, 16])
    mask = (jnp.arange(T)[None, None, :] < lengths[:, None, None]).astype(jnp.float32)  # [B,1,T]

    module = PositionalEncoding(channels=C, dropout=0.0, max_len=5000)

    y = jax.block_until_ready(module(x, mask=mask))                       # masked path
    y2 = jax.block_until_ready(module(x, mask=None))                      # mask-free path
    y3 = jax.block_until_ready(module(x, first_idx=4, last_idx=4 + T))    # pe-window path

    pe = module.pe[:, :, :T]
    ref = x * math.sqrt(C) + pe * mask
    ref2 = x * math.sqrt(C) + pe
    ref3 = x * math.sqrt(C) + module.pe[:, :, 4:4 + T]
    assert jnp.allclose(y, ref, atol=1e-5, rtol=1e-5)
    assert jnp.allclose(y2, ref2, atol=1e-5, rtol=1e-5)
    assert jnp.allclose(y3, ref3, atol=1e-5, rtol=1e-5)

    # ---- tiled path (total > 1 MiB, T not a multiple of the tile) ----
    B2, C2, T2 = 2, 64, 2176
    kx2, _ = jax.random.split(krest)
    xl = jax.random.normal(kx2, (B2, C2, T2), dtype=jnp.float32)
    lengths2 = jnp.array([1500, 2176])
    mask2 = (jnp.arange(T2)[None, None, :] < lengths2[:, None, None]).astype(jnp.float32)

    module2 = PositionalEncoding(channels=C2, dropout=0.0, max_len=5000)
    yl = jax.block_until_ready(module2(xl, mask=mask2))
    yl2 = jax.block_until_ready(module2(xl, mask=None))

    pe2 = module2.pe[:, :, :T2]
    refl = xl * math.sqrt(C2) + pe2 * mask2
    refl2 = xl * math.sqrt(C2) + pe2
    assert jnp.allclose(yl, refl, atol=1e-5, rtol=1e-5)
    assert jnp.allclose(yl2, refl2, atol=1e-5, rtol=1e-5)

    print("KERNEL_OK")
</pallas_src>

<mosaic_0001>
module attributes {stable_mosaic.version = 11 : i64} {
  func.func @_pos_enc_kernel_mask(%arg0: i32, %arg1: memref<2x32x16xf32, #tpu.memory_space<vmem>>, %arg2: memref<1x32x16xf32, #tpu.memory_space<vmem>>, %arg3: memref<2x1x16xf32, #tpu.memory_space<vmem>>, %arg4: memref<2x32x16xf32, #tpu.memory_space<vmem>>) attributes {dimension_semantics = [#tpu.dimension_semantics<arbitrary>], iteration_bounds = array<i64: 1>, scalar_prefetch = 0 : i64, scratch_operands = 0 : i64, tpu.core_type = #tpu.core_type<tc>, window_params = [{pipeline_mode = #tpu.pipeline_mode<synchronous>, transform_indices = @transform_0, window_bounds = array<i64: 2, 32, 16>}, {pipeline_mode = #tpu.pipeline_mode<synchronous>, transform_indices = @transform_1, window_bounds = array<i64: 1, 32, 16>}, {pipeline_mode = #tpu.pipeline_mode<synchronous>, transform_indices = @transform_2, window_bounds = array<i64: 2, 1, 16>}, {pipeline_mode = #tpu.pipeline_mode<synchronous>, transform_indices = @transform_3, window_bounds = array<i64: 2, 32, 16>}]} {
    %c0 = arith.constant 0 : index
    %c0_0 = arith.constant 0 : index
    %c0_1 = arith.constant 0 : index
    %0 = vector.load %arg1[%c0, %c0_0, %c0_1] : memref<2x32x16xf32, #tpu.memory_space<vmem>>, vector<2x32x16xf32>
    %c0_2 = arith.constant 0 : index
    %c0_3 = arith.constant 0 : index
    %c0_4 = arith.constant 0 : index
    %1 = vector.load %arg2[%c0_2, %c0_3, %c0_4] : memref<1x32x16xf32, #tpu.memory_space<vmem>>, vector<1x32x16xf32>
    %c0_5 = arith.constant 0 : index
    %c0_6 = arith.constant 0 : index
    %c0_7 = arith.constant 0 : index
    %2 = vector.load %arg3[%c0_5, %c0_6, %c0_7] : memref<2x1x16xf32, #tpu.memory_space<vmem>>, vector<2x1x16xf32>
    %cst = arith.constant 5.65685415 : f32
    %3 = vector.broadcast %cst : f32 to vector<2x32x16xf32>
    %4 = arith.mulf %0, %3 : vector<2x32x16xf32>
    %5 = vector.broadcast %1 : vector<1x32x16xf32> to vector<2x32x16xf32>
    %6 = vector.broadcast %2 : vector<2x1x16xf32> to vector<2x32x16xf32>
    %7 = arith.mulf %5, %6 : vector<2x32x16xf32>
    %8 = arith.addf %4, %7 : vector<2x32x16xf32>
    %c0_8 = arith.constant 0 : index
    %c0_9 = arith.constant 0 : index
    %c0_10 = arith.constant 0 : index
    %9 = vector.load %arg4[%c0_8, %c0_9, %c0_10] : memref<2x32x16xf32, #tpu.memory_space<vmem>>, vector<2x32x16xf32>
    tpu.vector_store %arg4[%c0_8, %c0_9, %c0_10], %8 {strides = array<i32>} : memref<2x32x16xf32, #tpu.memory_space<vmem>>, vector<2x32x16xf32>,
    return
  }
  func.func @transform_0(%arg0: i32) -> (i32, i32, i32) {
    %c0_i32 = arith.constant 0 : i32
    %c0_i32_0 = arith.constant 0 : i32
    %c0_i32_1 = arith.constant 0 : i32
    %c0_i32_2 = arith.constant 0 : i32
    return %c0_i32, %c0_i32_0, %c0_i32_1 : i32, i32, i32
  }
  func.func @transform_1(%arg0: i32) -> (i32, i32, i32) {
    %c0_i32 = arith.constant 0 : i32
    %c0_i32_0 = arith.constant 0 : i32
    %c0_i32_1 = arith.constant 0 : i32
    %c0_i32_2 = arith.constant 0 : i32
    return %c0_i32, %c0_i32_0, %c0_i32_1 : i32, i32, i32
  }
  func.func @transform_2(%arg0: i32) -> (i32, i32, i32) {
    %c0_i32 = arith.constant 0 : i32
    %c0_i32_0 = arith.constant 0 : i32
    %c0_i32_1 = arith.constant 0 : i32
    %c0_i32_2 = arith.constant 0 : i32
    return %c0_i32, %c0_i32_0, %c0_i32_1 : i32, i32, i32
  }
  func.func @transform_3(%arg0: i32) -> (i32, i32, i32) {
    %c0_i32 = arith.constant 0 : i32
    %c0_i32_0 = arith.constant 0 : i32
    %c0_i32_1 = arith.constant 0 : i32
    %c0_i32_2 = arith.constant 0 : i32
    return %c0_i32, %c0_i32_0, %c0_i32_1 : i32, i32, i32
  }
}

</mosaic_0001>

<bundles_post_ra>
// kernel: tpu_custom_call.1
= control target key start
LH: loop header
LB: loop body
LE: loop exit
PB: predicated region body
PF: predicated region fallthrough
CT: control target
= control target key end

     0   :  { %vm64_vm0 = vcmask 130048   ;;  %s173_s0 = inlined_call_operand.vmem [shape: f32[2,32,16], index: 0, kind: input, shape index: {}]   ;;  %s174_s1 = inlined_call_operand.vmem [shape: f32[1,32,16], index: 1, kind: input, shape index: {}]   ;;  %s175_s2 = inlined_call_operand.vmem [shape: f32[2,1,16], index: 2, kind: input, shape index: {}]   ;;  %s176_s3 = inlined_call_operand.vmem [shape: f32[2,32,16], index: 3, kind: output, shape index: {}]  }
   0x1   :  { %v14_v0 = vld [vmem:[%s173_s0] sm:$0xff]  ;;  %v15_v5 = vld [vmem:[%s173_s0 + $0x8] sm:$0xff]  ;;  %v16_v7 = vld [vmem:[%s173_s0 + $0x10] sm:$0xff] }
   0x2   :  { %v22_v1 = vld [vmem:[%s174_s1] sm:$0xff]  ;;  %v28_v3 = vmul.f32 5.656854, %v14_v0  ;;  %v23_v6 = vld [vmem:[%s174_s1 + $0x8] sm:$0xff]  ;;  %v29_v8 = vmul.f32 5.656854, %v15_v5 }
   0x3   :  { %v77_v2 = vld [vmem:[%s175_s2] ss:$0 sm:$0xff]  ;;  %v24_v10 = vld [vmem:[%s174_s1 + $0x10] sm:$0xff]  ;;  %v30_v11 = vmul.f32 5.656854, %v16_v7  ;;  %v17_v12 = vld [vmem:[%s173_s0 + $0x18] sm:$0xff] }
   0x4   :  { %v48_v4 = vmul.f32 %v77_v2, %v22_v1  ;;  %v49_v9 = vmul.f32 %v77_v2, %v23_v6  ;;  %v50_v14 = vmul.f32 %v77_v2, %v24_v10  ;;  %v25_v15 = vld [vmem:[%s174_s1 + $0x18] sm:$0xff]  ;;  %v31_v16 = vmul.f32 5.656854, %v17_v12  ;;  %v18_v17 = vld [vmem:[%s173_s0 + $0x20] sm:$0xff]  ;;  %v19_v23 = vld [vmem:[%s173_s0 + $0x28] sm:$0xff] }
   0x5   :  { %v78_v18 = vld [vmem:[%s175_s2 + $0x1] ss:$0 sm:$0xff]  ;;  %v51_v20 = vmul.f32 %v77_v2, %v25_v15  ;;  %v32_v21 = vmul.f32 5.656854, %v18_v17  ;;  %v20_v24 = vld [vmem:[%s173_s0 + $0x30] sm:$0xff]  ;;  %v21_v25 = vld [vmem:[%s173_s0 + $0x38] sm:$0xff] }
   0x6   :  { %v56_v13 = vadd.f32 %v48_v4, %v28_v3  ;;  %v57_v19 = vadd.f32 %v49_v9, %v29_v8  ;;  %v52_v22 = vmul.f32 %v78_v18, %v22_v1  ;;  %v58_v26 = vadd.f32 %v50_v14, %v30_v11 }
   0x7   :  { %v33_v27 = vmul.f32 5.656854, %v19_v23  ;;  %v53_v28 = vmul.f32 %v78_v18, %v23_v6  ;;  %v34_v29 = vmul.f32 5.656854, %v20_v24  ;;  %v59_v30 = vadd.f32 %v51_v20, %v31_v16 }
   0x8   :  { %65 = vst.msk [vmem:[%s176_s3] sm:$0xff] %vm64_vm0, %v56_v13  ;;  %66 = vst.msk [vmem:[%s176_s3 + $0x8] sm:$0xff] %vm64_vm0, %v57_v19  ;;  %v60_v31 = vadd.f32 %v52_v22, %v32_v21  ;;  %v54_v32 = vmul.f32 %v78_v18, %v24_v10  ;;  %v35_v33 = vmul.f32 5.656854, %v21_v25  ;;  %v55_v35 = vmul.f32 %v78_v18, %v25_v15 }
   0x9   :  { %67 = vst.msk [vmem:[%s176_s3 + $0x10] sm:$0xff] %vm64_vm0, %v58_v26  ;;  %v61_v34 = vadd.f32 %v53_v28, %v33_v27  ;;  %68 = vst.msk [vmem:[%s176_s3 + $0x18] sm:$0xff] %vm64_vm0, %v59_v30 }
   0xa   :  { %69 = vst.msk [vmem:[%s176_s3 + $0x20] sm:$0xff] %vm64_vm0, %v60_v31  ;;  %v62_v36 = vadd.f32 %v54_v32, %v34_v29  ;;  %v63_v37 = vadd.f32 %v55_v35, %v35_v33 }
   0xb   :  { %70 = vst.msk [vmem:[%s176_s3 + $0x28] sm:$0xff] %vm64_vm0, %v61_v34 }
   0xc   :  { %71 = vst.msk [vmem:[%s176_s3 + $0x30] sm:$0xff] %vm64_vm0, %v62_v36  ;;  %72 = vst.msk [vmem:[%s176_s3 + $0x38] sm:$0xff] %vm64_vm0, %v63_v37 }

</bundles_post_ra>
